<compile_context>
chip_gen: v7x
topology: tpu7x:2x2x1
jax: 0.10.0
libtpu: 0.0.40
codegen_flags: <defaults>
</compile_context>

<pallas_src>
import functools
import math

import jax
import jax.numpy as jnp
from jax.experimental import pallas as pl
from jax.experimental.pallas import tpu as pltpu

# ----------------------------- configuration --------------------------------
B = 2            # batch
NS = 4           # sentences per article
NT = 8           # tokens per sentence (truncate_tokens analog)
NL = 2           # bert layers (stand-in)
NH = 2           # bert heads (stand-in)
HIDDEN = 32      # clinical_bert_wrapper.hidden_size
OUTDIM = 32      # outdim (attention embed dim)
VOCAB = 50       # vocab_size
LS = 6           # provided summary length
TRUNCATE_SUMMARY = 50

START_ID, STOP_ID, MASK_ID = 1, 2, 3

VMEM_SPEC = pl.BlockSpec(memory_space=pltpu.MemorySpace.VMEM)


# ----------------------- kernel 1: traceback attention ----------------------
# Single block, no grid: all b*ns rows (~8 KB total) live in one VMEM tile.
# The chained (1,nt)x(nt,nt) products are done as VPU broadcast-multiplies +
# sublane reductions; M=1 MXU matmuls would be <1% utilization and pay
# push/pop latency for nothing.
def _ta_kernel(attn_ref, vec_ref, out_ref, *, nl, nh):
    a_all = attn_ref[...]                       # (Btot, nl, nh, nt, nt)
    v = vec_ref[...]                            # (Btot, nt)
    inv_nh = 1.0 / float(nh)
    for l in range(nl - 1, -1, -1):
        a = a_all[:, l, 0]
        for h in range(1, nh):
            a = a + a_all[:, l, h]
        a = a * inv_nh                          # mean over heads -> (Btot, nt, nt)
        # v_new[b, s] = sum_t v[b, t] * a[b, t, s]   (== v @ a per row)
        v = jnp.sum(v[:, :, None] * a, axis=1)
    out_ref[...] = v


def traceback_attention_pallas(attn_flat, vec_flat):
    # attn_flat: (b*ns, nl, nh, nt, nt), vec_flat: (b*ns, nt)
    Btot, nl, nh, nt, _ = attn_flat.shape
    kern = functools.partial(_ta_kernel, nl=nl, nh=nh)
    return pl.pallas_call(
        kern,
        in_specs=[VMEM_SPEC, VMEM_SPEC],
        out_specs=VMEM_SPEC,
        out_shape=jax.ShapeDtypeStruct((Btot, nt), jnp.float32),
    )(attn_flat, vec_flat)


# ----------------- kernel 2: fused decoder (ALL timesteps at once) ----------
def _decode_kernel(ds_ref, ts_ref, kpm_ref,
                   w1_ref, b1_ref,
                   wq_ref, bq_ref, wkv_ref, bkv_ref,
                   wo_ref, bo_ref,
                   w2_ref, b2_ref,
                   vocab_ref, attn_ref, *, b, nq, scale):
    # ds_ref:  (b*nq, H)   -- decoder hidden states for every teacher-forced step
    # ts_ref:  (b, ns, D)  -- encoder text states (constant across timesteps)
    # kpm_ref: (b, ns)     -- key padding mask (1.0 == padded)
    ds = ds_ref[...]
    dec = jnp.dot(ds, w1_ref[...], preferred_element_type=jnp.float32) + b1_ref[...]   # linear1 -> (BQ, D)

    # single-head MultiheadAttention(outdim, 1)
    q = (jnp.dot(dec, wq_ref[...], preferred_element_type=jnp.float32) + bq_ref[...]) * scale

    ts = ts_ref[...]                                                     # (b, ns, D)
    bb, ns, d = ts.shape
    # K/V projections: computed ONCE (hoisted out of the per-timestep path),
    # fused into a single (D, 2D) matmul.
    kv = jnp.dot(ts.reshape(bb * ns, d), wkv_ref[...],
                 preferred_element_type=jnp.float32) + bkv_ref[...]      # (b*ns, 2D)
    k = kv[:, :d].reshape(bb, ns, d)
    v = kv[:, d:].reshape(bb, ns, d)

    q3 = q.reshape(b, nq, d)
    scores = jnp.einsum("bqd,bsd->bqs", q3, k,
                        preferred_element_type=jnp.float32)              # (b, nq, ns)
    kpm = kpm_ref[...]
    scores = jnp.where(kpm[:, None, :] > 0.5, -1e30, scores)             # key_padding_mask
    scores = scores - jnp.max(scores, axis=-1, keepdims=True)
    e = jnp.exp(scores)
    w = e / jnp.sum(e, axis=-1, keepdims=True)                           # attention weights (b, nq, ns)

    ctx = jnp.einsum("bqs,bsd->bqd", w, v,
                     preferred_element_type=jnp.float32).reshape(b * nq, d)
    ctx = jnp.dot(ctx, wo_ref[...], preferred_element_type=jnp.float32) + bo_ref[...]

    # linear2 on cat([decoder_state, context]) as ONE (BQ, 2D) x (2D, VOCAB) matmul, then softmax
    enc = jnp.concatenate([dec, ctx], axis=-1)                           # (BQ, 2D)
    logits = jnp.dot(enc, w2_ref[...], preferred_element_type=jnp.float32) + b2_ref[...]
    logits = logits - jnp.max(logits, axis=-1, keepdims=True)
    el = jnp.exp(logits)
    vocab_ref[...] = el / jnp.sum(el, axis=-1, keepdims=True)            # (BQ, VOCAB)
    attn_ref[...] = w                                                    # (b, nq, ns)


def decode_all_timesteps_pallas(params, ds_hidden, text_states, key_padding_mask):
    bq, h = ds_hidden.shape
    b, ns, d = text_states.shape
    nq = bq // b
    vocab = params["b2"].shape[-1]

    flops = 2 * (bq * h * d + bq * d * d + b * ns * d * (2 * d)
                 + 2 * b * nq * ns * d + bq * d * d + bq * (2 * d) * vocab)
    transcendentals = b * nq * ns + bq * vocab
    bytes_accessed = 4 * (bq * h + b * ns * d + b * ns
                          + h * d + d + d * d + d + d * 2 * d + 2 * d
                          + d * d + d + 2 * d * vocab + vocab
                          + bq * vocab + b * nq * ns)

    kern = functools.partial(_decode_kernel, b=b, nq=nq, scale=1.0 / math.sqrt(d))
    vocab_dist, attn_w = pl.pallas_call(
        kern,
        in_specs=[VMEM_SPEC] * 13,
        out_specs=(VMEM_SPEC, VMEM_SPEC),
        out_shape=(jax.ShapeDtypeStruct((bq, vocab), jnp.float32),
                   jax.ShapeDtypeStruct((b, nq, ns), jnp.float32)),
        cost_estimate=pl.CostEstimate(flops=flops,
                                      transcendentals=transcendentals,
                                      bytes_accessed=bytes_accessed),
    )(ds_hidden, text_states, key_padding_mask,
      params["w1"], params["b1"],
      params["wq"], params["bq"], params["wkv"], params["bkv"],
      params["wo"], params["bo"],
      params["w2"], params["b2"])
    return vocab_dist, attn_w


# ----------------------------- parameter setup -------------------------------
def init_params(key):
    ks = jax.random.split(key, 16)

    def norm(k, shape, s=0.05):
        return (s * jax.random.normal(k, shape)).astype(jnp.float32)

    return dict(
        # ClinicalBertSentences stand-in
        sent_emb=norm(ks[0], (VOCAB, HIDDEN)),
        sent_proj_w=norm(ks[1], (HIDDEN, OUTDIM)),
        sent_proj_b=jnp.zeros((OUTDIM,), jnp.float32),
        wla_vec=norm(ks[2], (HIDDEN,), 1.0),
        # clinical_bert_wrapper stand-in (decoder side)
        dec_emb=norm(ks[3], (VOCAB, HIDDEN)),
        dec_w=norm(ks[4], (HIDDEN, HIDDEN)),
        dec_pos=norm(ks[5], (TRUNCATE_SUMMARY + 1, HIDDEN)),
        # Decoder.linear1
        w1=norm(ks[6], (HIDDEN, OUTDIM)), b1=norm(ks[7], (1, OUTDIM)),
        # Decoder.attention (nn.MultiheadAttention(outdim, 1)), weights stored (in, out)
        wq=norm(ks[8], (OUTDIM, OUTDIM)), bq=jnp.zeros((1, OUTDIM), jnp.float32),
        # fused K/V projection: wkv == concat([wk, wv], axis=1)
        wkv=norm(ks[9], (OUTDIM, 2 * OUTDIM)),
        bkv=jnp.zeros((1, 2 * OUTDIM), jnp.float32),
        wo=norm(ks[11], (OUTDIM, OUTDIM)), bo=jnp.zeros((1, OUTDIM), jnp.float32),
        # Decoder.linear2 as a single (2*outdim, vocab) matrix acting on cat([dec, ctx])
        w2=norm(ks[12], (2 * OUTDIM, VOCAB)),
        b2=norm(ks[14], (1, VOCAB)),
    )


# ----------------------- stand-in encoders (plain JAX glue) ------------------
def clinical_bert_sentences(params, article_sentences, article_sentences_lengths, attn_key):
    # TODO(synk): pretrained ClinicalBERT sentence encoder unavailable; deterministic stand-in.
    b, ns, nt = article_sentences.shape
    emb = params["sent_emb"][article_sentences]                              # (b, ns, nt, H)
    tok_mask = (jnp.arange(nt)[None, None, :] < article_sentences_lengths[:, :, None]).astype(jnp.float32)
    denom = jnp.maximum(article_sentences_lengths, 1).astype(jnp.float32)[:, :, None]
    pooled = jnp.sum(emb * tok_mask[..., None], axis=2) / denom              # (b, ns, H)
    encodings = jnp.tanh(pooled @ params["sent_proj_w"] + params["sent_proj_b"])  # (b, ns, D)

    wl_scores = jnp.einsum("bsth,h->bst", emb, params["wla_vec"])
    wl_scores = jnp.where(tok_mask > 0, wl_scores, -1e30)
    word_level_attentions = jax.nn.softmax(wl_scores, axis=-1)               # (b, ns, nt)

    raw = jax.random.normal(attn_key, (b, ns, NL, NH, nt, nt), dtype=jnp.float32)
    self_attentions = jax.nn.softmax(raw, axis=-1)                           # (b, ns, nl, nh, nt, nt)
    return encodings, self_attentions, word_level_attentions


def batched_decoder_states(params, summary, nq):
    # TODO(synk): clinical_bert_wrapper(partial_summary)[0][:, -1] stand-in, vectorized
    # across ALL teacher-forced timesteps at once (mask-pooled mean per partial summary).
    b, Ls = summary.shape
    emb = params["dec_emb"][summary]                                     # (b, Ls, H)
    csum = jnp.cumsum(emb, axis=1)                                       # csum[:, t-1] = sum of first t embeddings
    mask_emb = params["dec_emb"][MASK_ID]                                # (H,)
    ts = jnp.arange(1, nq + 1)                                           # timesteps 1 .. Ls-2
    sums = csum[:, ts - 1] + mask_emb[None, None, :]                     # (b, nq, H)
    pooled = sums / (ts + 1).astype(jnp.float32)[None, :, None]          # mean over partial length t+1
    pos = params["dec_pos"][ts]                                          # (nq, H)
    ds = jnp.tanh(pooled @ params["dec_w"] + pos[None])                  # (b, nq, H)
    return ds.reshape(b * nq, -1)


# ----------------------------- Model.forward ---------------------------------
def model_forward(params, article_sentences, article_sentences_lengths,
                  summary, summary_length, attn_key):
    encodings, self_attentions, word_level_attentions = clinical_bert_sentences(
        params, article_sentences, article_sentences_lengths, attn_key)
    b, ns, nl, nh, nt, _ = self_attentions.shape

    # traceback word-level attentions (ta) -- single-block Pallas kernel
    attn_flat = self_attentions.reshape(b * ns, nl, nh, nt, nt)
    vec_flat = word_level_attentions.reshape(b * ns, nt)
    traceback_wla = traceback_attention_pallas(attn_flat, vec_flat).reshape(b, ns, nt)

    encodings_length = jnp.sum((article_sentences_lengths > 0).astype(jnp.int32), axis=1)  # (b,)
    key_padding = (jnp.arange(ns)[None, :] >= encodings_length[:, None]).astype(jnp.float32)

    # Decoder.decode_train (teacher forcing): all Ls-2 timesteps in ONE fused kernel launch.
    summary = summary[:, :TRUNCATE_SUMMARY]
    Ls = summary.shape[1]
    nq = Ls - 2
    ds_hidden = batched_decoder_states(params, summary, nq)              # (b*nq, H)
    vocab_flat, attn_w = decode_all_timesteps_pallas(params, ds_hidden, encodings, key_padding)
    vocab_dist = vocab_flat.reshape(b, nq, -1)                           # (b, nq, VOCAB)

    ts = jnp.arange(1, nq + 1)
    valid = summary_length[:, None] > ts[None, :]                        # (b, nq)
    targets = summary[:, 1:Ls - 1]                                       # (b, nq)
    p_t = jnp.take_along_axis(vocab_dist, targets[..., None], axis=2)[..., 0]
    instance_losses = jnp.sum(jnp.where(valid, -jnp.log(p_t), 0.0), axis=1)
    sentence_level_attentions = jnp.where(valid[..., None], attn_w, 0.0)  # (b, nq, ns)

    # same clamp semantics as the PyTorch reference (clamp(0, truncate-1));
    # degenerate summary_length <= 1 divides by zero there too.
    decoded_summary_length = jnp.clip(summary_length - 1, 0, TRUNCATE_SUMMARY - 1)
    instance_losses = instance_losses / decoded_summary_length.astype(jnp.float32)

    # word-level x sentence-level combine: tiny elementwise broadcast, left to XLA fusion.
    attention = word_level_attentions[:, None, :, :] * sentence_level_attentions[..., None]
    traceback_attention = traceback_wla[:, None, :, :] * sentence_level_attentions[..., None]

    return dict(
        instance_losses=instance_losses,
        sentence_level_attentions=sentence_level_attentions,
        decoded_summary_length=decoded_summary_length,
        attention=attention,
        traceback_attention=traceback_attention,
        article_sentences_lengths=article_sentences_lengths,
    )


# ------------------------------------ main ------------------------------------
if __name__ == "__main__":
    key = jax.random.PRNGKey(0)
    kp, k1, k2, k3, kattn = jax.random.split(key, 5)

    params = init_params(kp)

    article_sentences = jax.random.randint(k1, (B, NS, NT), 0, VOCAB, dtype=jnp.int32)
    article_sentences_lengths = jax.random.randint(k2, (B, NS), 1, NT + 1, dtype=jnp.int32)
    article_sentences_lengths = article_sentences_lengths.at[:, -1].set(0)  # exercise key padding

    summary = jax.random.randint(k3, (B, LS), 4, VOCAB, dtype=jnp.int32)
    summary = summary.at[:, 0].set(START_ID).at[:, -1].set(STOP_ID)
    summary_length = jnp.array([LS - 1, LS], dtype=jnp.int32)

    fwd = jax.jit(model_forward)
    out = fwd(params, article_sentences, article_sentences_lengths,
              summary, summary_length, kattn)
    jax.block_until_ready(out["attention"])
    jax.block_until_ready(out["instance_losses"])

    assert out["attention"].shape == (B, LS - 2, NS, NT)
    assert out["traceback_attention"].shape == (B, LS - 2, NS, NT)
    assert out["sentence_level_attentions"].shape == (B, LS - 2, NS)
    assert out["instance_losses"].shape == (B,)
    assert bool(jnp.all(jnp.isfinite(out["instance_losses"])))
    print("KERNEL_OK")
</pallas_src>

<mosaic_0001>
module attributes {stable_mosaic.version = 11 : i64} {
  func.func @_decode_kernel(%arg0: memref<8x32xf32, #tpu.memory_space<vmem>>, %arg1: memref<2x4x32xf32, #tpu.memory_space<vmem>>, %arg2: memref<2x4xf32, #tpu.memory_space<vmem>>, %arg3: memref<32x32xf32, #tpu.memory_space<vmem>>, %arg4: memref<1x32xf32, #tpu.memory_space<vmem>>, %arg5: memref<32x32xf32, #tpu.memory_space<vmem>>, %arg6: memref<1x32xf32, #tpu.memory_space<vmem>>, %arg7: memref<32x64xf32, #tpu.memory_space<vmem>>, %arg8: memref<1x64xf32, #tpu.memory_space<vmem>>, %arg9: memref<32x32xf32, #tpu.memory_space<vmem>>, %arg10: memref<1x32xf32, #tpu.memory_space<vmem>>, %arg11: memref<64x50xf32, #tpu.memory_space<vmem>>, %arg12: memref<1x50xf32, #tpu.memory_space<vmem>>, %arg13: memref<8x50xf32, #tpu.memory_space<vmem>>, %arg14: memref<2x4x4xf32, #tpu.memory_space<vmem>>) attributes {dimension_semantics = [], scalar_prefetch = 0 : i64, scratch_operands = 0 : i64, tpu.core_type = #tpu.core_type<tc>} {
    %c0 = arith.constant 0 : index
    %c0_0 = arith.constant 0 : index
    %0 = vector.load %arg0[%c0, %c0_0] : memref<8x32xf32, #tpu.memory_space<vmem>>, vector<8x32xf32>
    %c0_1 = arith.constant 0 : index
    %c0_2 = arith.constant 0 : index
    %1 = vector.load %arg3[%c0_1, %c0_2] : memref<32x32xf32, #tpu.memory_space<vmem>>, vector<32x32xf32>
    %cst = arith.constant dense<0.000000e+00> : vector<8x32xf32>
    %2 = tpu.matmul %0, %1, %cst {dimension_numbers = #tpu.dot_dimension_numbers<[1], [0], [0], [1], [0, 0, 1, 1], [], []>} : vector<8x32xf32>, vector<32x32xf32>, vector<8x32xf32> -> vector<8x32xf32>
    %c0_3 = arith.constant 0 : index
    %c0_4 = arith.constant 0 : index
    %3 = vector.load %arg4[%c0_3, %c0_4] : memref<1x32xf32, #tpu.memory_space<vmem>>, vector<1x32xf32>
    %4 = vector.broadcast %3 : vector<1x32xf32> to vector<8x32xf32>
    %5 = arith.addf %2, %4 : vector<8x32xf32>
    %c0_5 = arith.constant 0 : index
    %c0_6 = arith.constant 0 : index
    %6 = vector.load %arg5[%c0_5, %c0_6] : memref<32x32xf32, #tpu.memory_space<vmem>>, vector<32x32xf32>
    %cst_7 = arith.constant dense<0.000000e+00> : vector<8x32xf32>
    %7 = tpu.matmul %5, %6, %cst_7 {dimension_numbers = #tpu.dot_dimension_numbers<[1], [0], [0], [1], [0, 0, 1, 1], [], []>} : vector<8x32xf32>, vector<32x32xf32>, vector<8x32xf32> -> vector<8x32xf32>
    %c0_8 = arith.constant 0 : index
    %c0_9 = arith.constant 0 : index
    %8 = vector.load %arg6[%c0_8, %c0_9] : memref<1x32xf32, #tpu.memory_space<vmem>>, vector<1x32xf32>
    %9 = vector.broadcast %8 : vector<1x32xf32> to vector<8x32xf32>
    %10 = arith.addf %7, %9 : vector<8x32xf32>
    %cst_10 = arith.constant 0.176776692 : f32
    %11 = vector.broadcast %cst_10 : f32 to vector<8x32xf32>
    %12 = arith.mulf %10, %11 : vector<8x32xf32>
    %c0_11 = arith.constant 0 : index
    %c0_12 = arith.constant 0 : index
    %c0_13 = arith.constant 0 : index
    %13 = vector.load %arg1[%c0_11, %c0_12, %c0_13] : memref<2x4x32xf32, #tpu.memory_space<vmem>>, vector<2x4x32xf32>
    %14 = vector.shape_cast %13 : vector<2x4x32xf32> to vector<8x32xf32>
    %c0_14 = arith.constant 0 : index
    %c0_15 = arith.constant 0 : index
    %15 = vector.load %arg7[%c0_14, %c0_15] : memref<32x64xf32, #tpu.memory_space<vmem>>, vector<32x64xf32>
    %cst_16 = arith.constant dense<0.000000e+00> : vector<8x64xf32>
    %16 = tpu.matmul %14, %15, %cst_16 {dimension_numbers = #tpu.dot_dimension_numbers<[1], [0], [0], [1], [0, 0, 1, 1], [], []>} : vector<8x32xf32>, vector<32x64xf32>, vector<8x64xf32> -> vector<8x64xf32>
    %c0_17 = arith.constant 0 : index
    %c0_18 = arith.constant 0 : index
    %17 = vector.load %arg8[%c0_17, %c0_18] : memref<1x64xf32, #tpu.memory_space<vmem>>, vector<1x64xf32>
    %18 = vector.broadcast %17 : vector<1x64xf32> to vector<8x64xf32>
    %19 = arith.addf %16, %18 : vector<8x64xf32>
    %20 = vector.extract_strided_slice %19 {offsets = [0, 0], sizes = [8, 32], strides = [1, 1]} : vector<8x64xf32> to vector<8x32xf32>
    %21 = vector.shape_cast %20 : vector<8x32xf32> to vector<2x4x32xf32>
    %22 = vector.extract_strided_slice %19 {offsets = [0, 32], sizes = [8, 32], strides = [1, 1]} : vector<8x64xf32> to vector<8x32xf32>
    %23 = vector.shape_cast %22 : vector<8x32xf32> to vector<2x4x32xf32>
    %24 = vector.shape_cast %12 : vector<8x32xf32> to vector<2x4x32xf32>
    "tpu.trace_start"() <{level = 10 : i32, message = "bqd,bsd->bqs"}> : () -> ()
    %cst_19 = arith.constant dense<0.000000e+00> : vector<2x4x4xf32>
    %25 = tpu.matmul %24, %21, %cst_19 {dimension_numbers = #tpu.dot_dimension_numbers<[2], [2], [1], [1], [0, 0, 0, 1, 1, 1], [0], [0]>} : vector<2x4x32xf32>, vector<2x4x32xf32>, vector<2x4x4xf32> -> vector<2x4x4xf32>
    "tpu.trace_stop"() : () -> ()
    %c0_20 = arith.constant 0 : index
    %c0_21 = arith.constant 0 : index
    %26 = vector.load %arg2[%c0_20, %c0_21] : memref<2x4xf32, #tpu.memory_space<vmem>>, vector<2x4xf32>
    %27 = vector.shape_cast %26 : vector<2x4xf32> to vector<2x1x4xf32>
    %cst_22 = arith.constant 5.000000e-01 : f32
    %28 = vector.broadcast %cst_22 : f32 to vector<2x1x4xf32>
    %29 = arith.cmpf ogt, %27, %28 : vector<2x1x4xf32>
    %cst_23 = arith.constant -1.000000e+30 : f32
    %30 = vector.shape_cast %29 : vector<2x1x4xi1> to vector<2x1x4xi1>
    %31 = vector.broadcast %30 : vector<2x1x4xi1> to vector<2x4x4xi1>
    %32 = vector.broadcast %cst_23 : f32 to vector<2x4x4xf32>
    %33 = arith.select %31, %32, %25 : vector<2x4x4xi1>, vector<2x4x4xf32>
    %cst_24 = arith.constant dense<0xFF800000> : vector<2x4xf32>
    %34 = vector.multi_reduction <maximumf>, %33, %cst_24 [2] : vector<2x4x4xf32> to vector<2x4xf32>
    %35 = vector.shape_cast %34 : vector<2x4xf32> to vector<2x4x1xf32>
    %36 = vector.broadcast %35 : vector<2x4x1xf32> to vector<2x4x4xf32>
    %37 = arith.subf %33, %36 : vector<2x4x4xf32>
    %38 = math.exp %37 : vector<2x4x4xf32>
    %cst_25 = arith.constant dense<0.000000e+00> : vector<2x4xf32>
    %39 = vector.multi_reduction <add>, %38, %cst_25 [2] : vector<2x4x4xf32> to vector<2x4xf32>
    %40 = vector.shape_cast %39 : vector<2x4xf32> to vector<2x4x1xf32>
    %41 = vector.broadcast %40 : vector<2x4x1xf32> to vector<2x4x4xf32>
    %42 = arith.divf %38, %41 : vector<2x4x4xf32>
    "tpu.trace_start"() <{level = 10 : i32, message = "bqs,bsd->bqd"}> : () -> ()
    %cst_26 = arith.constant dense<0.000000e+00> : vector<2x4x32xf32>
    %43 = tpu.matmul %42, %23, %cst_26 {dimension_numbers = #tpu.dot_dimension_numbers<[2], [1], [1], [2], [0, 0, 0, 1, 1, 2], [0], [0]>} : vector<2x4x4xf32>, vector<2x4x32xf32>, vector<2x4x32xf32> -> vector<2x4x32xf32>
    "tpu.trace_stop"() : () -> ()
    %44 = vector.shape_cast %43 : vector<2x4x32xf32> to vector<8x32xf32>
    %c0_27 = arith.constant 0 : index
    %c0_28 = arith.constant 0 : index
    %45 = vector.load %arg9[%c0_27, %c0_28] : memref<32x32xf32, #tpu.memory_space<vmem>>, vector<32x32xf32>
    %cst_29 = arith.constant dense<0.000000e+00> : vector<8x32xf32>
    %46 = tpu.matmul %44, %45, %cst_29 {dimension_numbers = #tpu.dot_dimension_numbers<[1], [0], [0], [1], [0, 0, 1, 1], [], []>} : vector<8x32xf32>, vector<32x32xf32>, vector<8x32xf32> -> vector<8x32xf32>
    %c0_30 = arith.constant 0 : index
    %c0_31 = arith.constant 0 : index
    %47 = vector.load %arg10[%c0_30, %c0_31] : memref<1x32xf32, #tpu.memory_space<vmem>>, vector<1x32xf32>
    %48 = vector.broadcast %47 : vector<1x32xf32> to vector<8x32xf32>
    %49 = arith.addf %46, %48 : vector<8x32xf32>
    %50 = tpu.concatenate %5, %49 in 1 : vector<8x32xf32>, vector<8x32xf32> -> vector<8x64xf32>
    %c0_32 = arith.constant 0 : index
    %c0_33 = arith.constant 0 : index
    %51 = vector.load %arg11[%c0_32, %c0_33] : memref<64x50xf32, #tpu.memory_space<vmem>>, vector<64x50xf32>
    %cst_34 = arith.constant dense<0.000000e+00> : vector<8x50xf32>
    %52 = tpu.matmul %50, %51, %cst_34 {dimension_numbers = #tpu.dot_dimension_numbers<[1], [0], [0], [1], [0, 0, 1, 1], [], []>} : vector<8x64xf32>, vector<64x50xf32>, vector<8x50xf32> -> vector<8x50xf32>
    %c0_35 = arith.constant 0 : index
    %c0_36 = arith.constant 0 : index
    %53 = vector.load %arg12[%c0_35, %c0_36] : memref<1x50xf32, #tpu.memory_space<vmem>>, vector<1x50xf32>
    %54 = vector.broadcast %53 : vector<1x50xf32> to vector<8x50xf32>
    %55 = arith.addf %52, %54 : vector<8x50xf32>
    %cst_37 = arith.constant dense<0xFF800000> : vector<8xf32>
    %56 = vector.multi_reduction <maximumf>, %55, %cst_37 [1] : vector<8x50xf32> to vector<8xf32>
    %57 = vector.shape_cast %56 : vector<8xf32> to vector<8x1xf32>
    %58 = vector.broadcast %57 : vector<8x1xf32> to vector<8x50xf32>
    %59 = arith.subf %55, %58 : vector<8x50xf32>
    %60 = math.exp %59 : vector<8x50xf32>
    %cst_38 = arith.constant dense<0.000000e+00> : vector<8xf32>
    %61 = vector.multi_reduction <add>, %60, %cst_38 [1] : vector<8x50xf32> to vector<8xf32>
    %62 = vector.shape_cast %61 : vector<8xf32> to vector<8x1xf32>
    %63 = vector.broadcast %62 : vector<8x1xf32> to vector<8x50xf32>
    %64 = arith.divf %60, %63 : vector<8x50xf32>
    %c0_39 = arith.constant 0 : index
    %c0_40 = arith.constant 0 : index
    %65 = vector.load %arg13[%c0_39, %c0_40] : memref<8x50xf32, #tpu.memory_space<vmem>>, vector<8x50xf32>
    tpu.vector_store %arg13[%c0_39, %c0_40], %64 {strides = array<i32>} : memref<8x50xf32, #tpu.memory_space<vmem>>, vector<8x50xf32>,
    %c0_41 = arith.constant 0 : index
    %c0_42 = arith.constant 0 : index
    %c0_43 = arith.constant 0 : index
    %66 = vector.load %arg14[%c0_41, %c0_42, %c0_43] : memref<2x4x4xf32, #tpu.memory_space<vmem>>, vector<2x4x4xf32>
    tpu.vector_store %arg14[%c0_41, %c0_42, %c0_43], %42 {strides = array<i32>} : memref<2x4x4xf32, #tpu.memory_space<vmem>>, vector<2x4x4xf32>,
    return
  }
}

module attributes {stable_mosaic.version = 11 : i64} {
  func.func @_ta_kernel(%arg0: memref<8x2x2x8x8xf32, #tpu.memory_space<vmem>>, %arg1: memref<8x8xf32, #tpu.memory_space<vmem>>, %arg2: memref<8x8xf32, #tpu.memory_space<vmem>>) attributes {dimension_semantics = [], scalar_prefetch = 0 : i64, scratch_operands = 0 : i64, tpu.core_type = #tpu.core_type<tc>} {
    %c0 = arith.constant 0 : index
    %c0_0 = arith.constant 0 : index
    %c0_1 = arith.constant 0 : index
    %c0_2 = arith.constant 0 : index
    %c0_3 = arith.constant 0 : index
    %0 = vector.load %arg0[%c0, %c0_0, %c0_1, %c0_2, %c0_3] : memref<8x2x2x8x8xf32, #tpu.memory_space<vmem>>, vector<8x2x2x8x8xf32>
    %c0_4 = arith.constant 0 : index
    %c0_5 = arith.constant 0 : index
    %1 = vector.load %arg1[%c0_4, %c0_5] : memref<8x8xf32, #tpu.memory_space<vmem>>, vector<8x8xf32>
    %2 = vector.extract_strided_slice %0 {offsets = [0, 1, 0, 0, 0], sizes = [8, 1, 1, 8, 8], strides = [1, 1, 1, 1, 1]} : vector<8x2x2x8x8xf32> to vector<8x1x1x8x8xf32>
    %3 = vector.shape_cast %2 : vector<8x1x1x8x8xf32> to vector<8x8x8xf32>
    %4 = vector.extract_strided_slice %0 {offsets = [0, 1, 1, 0, 0], sizes = [8, 1, 1, 8, 8], strides = [1, 1, 1, 1, 1]} : vector<8x2x2x8x8xf32> to vector<8x1x1x8x8xf32>
    %5 = vector.shape_cast %4 : vector<8x1x1x8x8xf32> to vector<8x8x8xf32>
    %6 = arith.addf %3, %5 : vector<8x8x8xf32>
    %cst = arith.constant 5.000000e-01 : f32
    %7 = vector.broadcast %cst : f32 to vector<8x8x8xf32>
    %8 = arith.mulf %6, %7 : vector<8x8x8xf32>
    %9 = vector.shape_cast %1 : vector<8x8xf32> to vector<8x8x1xf32>
    %10 = vector.broadcast %9 : vector<8x8x1xf32> to vector<8x8x8xf32>
    %11 = arith.mulf %10, %8 : vector<8x8x8xf32>
    %cst_6 = arith.constant dense<0.000000e+00> : vector<8x8xf32>
    %12 = vector.multi_reduction <add>, %11, %cst_6 [1] : vector<8x8x8xf32> to vector<8x8xf32>
    %13 = vector.extract_strided_slice %0 {offsets = [0, 0, 0, 0, 0], sizes = [8, 1, 1, 8, 8], strides = [1, 1, 1, 1, 1]} : vector<8x2x2x8x8xf32> to vector<8x1x1x8x8xf32>
    %14 = vector.shape_cast %13 : vector<8x1x1x8x8xf32> to vector<8x8x8xf32>
    %15 = vector.extract_strided_slice %0 {offsets = [0, 0, 1, 0, 0], sizes = [8, 1, 1, 8, 8], strides = [1, 1, 1, 1, 1]} : vector<8x2x2x8x8xf32> to vector<8x1x1x8x8xf32>
    %16 = vector.shape_cast %15 : vector<8x1x1x8x8xf32> to vector<8x8x8xf32>
    %17 = arith.addf %14, %16 : vector<8x8x8xf32>
    %cst_7 = arith.constant 5.000000e-01 : f32
    %18 = vector.broadcast %cst_7 : f32 to vector<8x8x8xf32>
    %19 = arith.mulf %17, %18 : vector<8x8x8xf32>
    %20 = vector.shape_cast %12 : vector<8x8xf32> to vector<8x8x1xf32>
    %21 = vector.broadcast %20 : vector<8x8x1xf32> to vector<8x8x8xf32>
    %22 = arith.mulf %21, %19 : vector<8x8x8xf32>
    %cst_8 = arith.constant dense<0.000000e+00> : vector<8x8xf32>
    %23 = vector.multi_reduction <add>, %22, %cst_8 [1] : vector<8x8x8xf32> to vector<8x8xf32>
    %c0_9 = arith.constant 0 : index
    %c0_10 = arith.constant 0 : index
    %24 = vector.load %arg2[%c0_9, %c0_10] : memref<8x8xf32, #tpu.memory_space<vmem>>, vector<8x8xf32>
    tpu.vector_store %arg2[%c0_9, %c0_10], %23 {strides = array<i32>} : memref<8x8xf32, #tpu.memory_space<vmem>>, vector<8x8xf32>,
    return
  }
}

</mosaic_0001>

<bundles_post_ra>
// kernel: model_forward.2
= control target key start
LH: loop header
LB: loop body
LE: loop exit
PB: predicated region body
PF: predicated region fallthrough
CT: control target
= control target key end

     0   :  { %v1076_v0 = vmov 0.0|0.0   ;;  %vm1077_vm0 = vmmov 0   ;;  %v1078_v4 = vmov 0.0   ;;  %vm58_vm1 = vcmask 261120   ;;  %s1082_s27 = smov 32   ;;  %s1325_s3 = inlined_call_operand.vmem [shape: f32[32,32], index: 3, kind: input, shape index: {}]   ;;  %s1326_s5 = inlined_call_operand.vmem [shape: f32[32,32], index: 5, kind: input, shape index: {}]   ;;  %s1327_s7 = inlined_call_operand.vmem [shape: f32[32,64], index: 7, kind: input, shape index: {}]   ;;  %s1328_s0 = inlined_call_operand.vmem [shape: f32[8,32], index: 0, kind: input, shape index: {}]   ;;  %s1329_s1 = inlined_call_operand.vmem [shape: f32[2,4,32], index: 1, kind: input, shape index: {}]   ;;  %s1330_s4 = inlined_call_operand.vmem [shape: f32[1,32], index: 4, kind: input, shape index: {}]   ;;  %s1331_s8 = inlined_call_operand.vmem [shape: f32[1,64], index: 8, kind: input, shape index: {}]   ;;  %s1332_s6 = inlined_call_operand.vmem [shape: f32[1,32], index: 6, kind: input, shape index: {}]   ;;  %s1333_s2 = inlined_call_operand.vmem [shape: f32[2,4], index: 2, kind: input, shape index: {}]   ;;  %s1334_s14 = inlined_call_operand.vmem [shape: f32[2,4,4], index: 14, kind: output, shape index: {1}]   ;;  %s1335_s9 = inlined_call_operand.vmem [shape: f32[32,32], index: 9, kind: input, shape index: {}]   ;;  %s1336_s11 = inlined_call_operand.vmem [shape: f32[64,50], index: 11, kind: input, shape index: {}]   ;;  %s1337_s10 = inlined_call_operand.vmem [shape: f32[1,32], index: 10, kind: input, shape index: {}]   ;;  %s1338_s12 = inlined_call_operand.vmem [shape: f32[1,50], index: 12, kind: input, shape index: {}]   ;;  %s1339_s13 = inlined_call_operand.vmem [shape: f32[8,50], index: 13, kind: output, shape index: {0}]  }
   0x1   :  { %1020 = vmatprep.subr.bf16.mxu0 %v1076_v0  ;;  %v47_v1 = vld [vmem:[%s1325_s3] sm:$0xff]  ;;  %v48_v2 = vld [vmem:[%s1325_s3 + $0x8] sm:$0xff]  ;;  %v49_v3 = vld [vmem:[%s1325_s3 + $0x10] sm:$0xff]  ;;  %945 = vmatprep.mubr.msk.f32.mxu0 %vm1077_vm0, %v1078_v4  ;;  %v1079_v37 = vmov 1966171168   ;;  %v470_v39 = vlaneseq  ;;  %v1080_v48 = vmov 0  }
   0x2   :  { %v1021_v5 = vpack.c.bf16 %v48_v2, %v47_v1  ;;  %v50_v6 = vld [vmem:[%s1325_s3 + $0x18] sm:$0xff]  ;;  %1026 = vmatprep.subr.bf16.mxu1 %v1076_v0  ;;  %956 = vmatprep.mubr.msk.f32.mxu1 %vm1077_vm0, %v1078_v4  ;;  %v132_v7 = vld [vmem:[%s1326_s5] sm:$0xff]  ;;  %v133_v8 = vld [vmem:[%s1326_s5 + $0x8] sm:$0xff]  ;;  %v468_v38 = vunpack.c.l.s4 %v1079_v37  ;;  %vm499_vm5 = vcmask 27648   ;;  %vm528_vm7 = vcmask 1043456  }
   0x3   :  { %v1024_v9 = vpack.c.bf16 %v50_v6, %v49_v3  ;;  %v1027_v10 = vpack.c.bf16 %v133_v8, %v132_v7  ;;  %v219_v11 = vld [vmem:[%s1327_s7] sm:$0xff]  ;;  %v220_v12 = vld [vmem:[%s1327_s7 + $0x8] sm:$0xff]  ;;  %v221_v15 = vld [vmem:[%s1327_s7 + $0x10] sm:$0xff]  ;;  %v471_v41 = vshrl.u32 %v470_v39, 7  ;;  %vm524_vm8 = vcmask 31744  }
   0x4   :  { %1022 = vmatpush3.bf16.msra.mxu0 %v1021_v5  ;;  %v46_v13 = vld [vmem:[%s1328_s0] sm:$0xff]  ;;  %v1033_v14 = vpack.c.bf16 %v220_v12, %v219_v11  ;;  %v222_v16 = vld [vmem:[%s1327_s7 + $0x18] sm:$0xff]  ;;  %v134_v18 = vld [vmem:[%s1326_s5 + $0x10] sm:$0xff]  ;;  %v469_v40 = vunpack.c.0.s8 %v468_v38  ;;  %vm784_vm9 = vcmask 523264   ;;  %vm858_vm10 = vcmask 408576  }
   0x5   :  { %1023 = vmatprep.subr.bf16.mxu0 %v1076_v0  ;;  %1028 = vmatpush3.bf16.msra.mxu1 %v1027_v10  ;;  %v1036_v17 = vpack.c.bf16 %v222_v16, %v221_v15  ;;  %v135_v19 = vld [vmem:[%s1326_s5 + $0x18] sm:$0xff]  ;;  %v1063_v21 = vld [vmem:[%s1329_s1] sm:$0xff]   ;;  %v489_v47 = vsub.s32 0, %v471_v41  ;;  %v775_v37 = vld [vmem:[%s1336_s11 + $0x30] sm:$0xff] }
   0x6   :  { %1029 = vmatprep.subr.bf16.mxu1 %v1076_v0  ;;  %v1030_v20 = vpack.c.bf16 %v135_v19, %v134_v18  ;;  %v881_v22 = vld [vmem:[%s1330_s4] ss:$0 sm:$0xff]  ;;  %v472_v43 = vsub.s32 %v469_v40, %v471_v41  ;;  %v679_v18 = vld [vmem:[%s1335_s9 + $0x8] sm:$0xff]  ;;  %v776_v38 = vld [vmem:[%s1336_s11 + $0x38] sm:$0xff] }
   0x7   :  { %v885_v26 = vld [vmem:[%s1331_s8] ss:$0 sm:$0xff]  ;;  %v1054_v39 = vpack.c.bf16 %v776_v38, %v775_v37 }
   0x8   :  { %1025 = vmatpush3.bf16.msra.mxu0 %v1024_v9  ;;  %v883_v31 = vld [vmem:[%s1332_s6] ss:$0 sm:$0xff] }
   0x9   :  { %1032 = vmatprep.subr.bf16.mxu0 %v1076_v0  ;;  %1031 = vmatpush3.bf16.msra.mxu1 %v1030_v20  ;;  %v891_v42 = vld.sshfl [vmem:[%s1333_s2] sm:$0x11 pattern:$0x75316420]  ;;  %s1081_s2 = smov 96   ;;  %v680_v20 = vld [vmem:[%s1335_s9 + $0x10] sm:$0xff] }
   0xa   :  { %975 = vmatprep.subr.mxu1 %v1078_v4  ;;  %v466_v44 = vcombine.high %v891_v42, %v891_v42  ;;  %v473_v45 = vrot.slane %v891_v42, %v472_v43  ;;  %v896_v40 = vld [vmem:[%s1337_s10] ss:$0 sm:$0xff] }
   0xb   :  { %946 = vmatmul.mubr.msk.f32.vlgmr.msra.gmra.mrb[0].mxu0 %vm58_vm1, %v46_v13 }
   0xc   :  { %1034 = vmatpush3.bf16.msra.mxu0 %v1033_v14  ;;  %967 = vmatprep.mubr.msk.f32.mxu0 %vm1077_vm0, %v1078_v4  ;;  %v480_v46 = vrot.slane %v466_v44, %v472_v43  ;;  %vm483_vm2 = vcmp.gt.f32.partialorder %v473_v45, 0.5 }
   0xd   :  { %1035 = vmatprep.subr.bf16.mxu0 %v1076_v0  ;;  %v485_v49 = vsel %vm483_vm2, 1, %v1080_v48 }
   0xe   :  { %vm484_vm3 = vcmp.gt.f32.partialorder %v480_v46, 0.5  ;;  %v490_v51 = vrot.slane %v485_v49, %v489_v47 }
   0xf   :  { %v486_v50 = vsel %vm484_vm3, 1, %v1080_v48 }
  0x10   :  { %1037 = vmatpush3.bf16.msra.mxu0 %v1036_v17  ;;  %v494_v52 = vrot.slane %v486_v50, %v489_v47  ;;  %vm495_vm4 = vcmp.eq.s32.totalorder %v490_v51, 1  ;;  %v678_v17 = vld [vmem:[%s1335_s9] sm:$0xff] }
  0x11   :  { %970 = vmatprep.subr.mxu0 %v1078_v4  ;;  %v1039_v19 = vpack.c.bf16 %v679_v18, %v678_v17 }
  0x12   :  { %vm496_vm6 = vcmp.eq.s32.totalorder %v494_v52, 1 }
  0x13   :  { %968 = vmatmul.mubr.msk.f32.vlgmr.msra.gmra.mrb[2].mxu0 %vm58_vm1, %v1063_v21 }
  0x14   :  { %972 = vmatprep.mubr.msk.f32.mxu0 %vm1077_vm0, %v1078_v4 }
  0xde   :  { %v128_v23 = vpop.f32.mrb[0].mxu0 }
  0xdf   :  { %v1221_v24 = vadd.f32 %v881_v22, %v128_v23  ;;  %v947_v25 = vpop.f32.mrb[1].mxu0 }
  0xe1   :  { %957 = vmatmul.mubr.msk.f32.vlgmr.msra.gmra.mrb[0].mxu1 %vm58_vm1, %v1221_v24 }
  0xe2   :  { %977 = vmatprep.mubr.msk.f32.mxu1 %vm1077_vm0, %v1078_v4 }
  0xe6   :  { %v301_v27 = vpop.f32.mrb[2].mxu0 }
  0xe7   :  { %v302_v28 = vadd.f32 %v885_v26, %v301_v27  ;;  %v969_v29 = vpop.f32.mrb[3].mxu0 }
  0xe8   :  { %v770_v29 = vld [vmem:[%s1336_s11 + $0x8] sm:$0xff] }
  0xe9   :  { %v1230_v30 = vcombine.high %v302_v28, %v302_v28  ;;  %971 = vmatpush3.xpose.msk.msra.mxu0 %vm58_vm1, %v302_v28 }
  0xea   :  { %980 = vmatprep.subr.mxu0 %v1078_v4 }
  0xeb   :  { %976 = vmatpush3.xpose.msk.msra.mxu1 %vm58_vm1, %v1230_v30 }
  0xec   :  { %985 = vmatprep.subr.mxu1 %v1078_v4 }
 0x1b4   :  { %v212_v32 = vpop.f32.mrb[0].mxu1 }
 0x1b5   :  { %v213_v33 = vadd.f32 %v883_v31, %v212_v32  ;;  %v958_v34 = vpop.f32.mrb[1].mxu1  ;;  %v772_v32 = vld [vmem:[%s1336_s11 + $0x18] sm:$0xff] }
 0x1b6   :  { %v773_v34 = vld [vmem:[%s1336_s11 + $0x20] sm:$0xff] }
 0x1b7   :  { %v216_v35 = vmul.f32 0.17677669, %v213_v33 }
 0x1b9   :  { %v308_v36 = vcombine.high %v216_v35, %v216_v35  ;;  %973 = vmatmul.mubr.msk.f32.vlgmr.msra.gmra.mrb[4].mxu0 %vm58_vm1, %v216_v35  ;;  %v774_v35 = vld [vmem:[%s1336_s11 + $0x28] sm:$0xff] }
 0x1ba   :  { %982 = vmatprep.mubr.msk.f32.mxu0 %vm1077_vm0, %v1078_v4 }
 0x1bb   :  { %978 = vmatmul.mubr.msk.f32.vlgmr.msra.gmra.mrb[2].mxu1 %vm58_vm1, %v308_v36  ;;  %v1051_v36 = vpack.c.bf16 %v774_v35, %v773_v34 }
 0x1bc   :  { %987 = vmatprep.mubr.msk.f32.mxu1 %vm1077_vm0, %v1078_v4 }
 0x28c   :  { %v379_v53 = vpop.f32.mrb[4].mxu0 }
 0x28d   :  { %v497_v54 = vsel %vm495_vm4, -1e+30, %v379_v53  ;;  %v974_v55 = vpop.f32.mrb[5].mxu0 }
 0x28e   :  { %v453_v56 = vpop.f32.mrb[2].mxu1  ;;  %v500_v57 = vsel %vm499_vm5, %v497_v54, -inf }
 0x28f   :  { %v498_v58 = vsel %vm496_vm6, -1e+30, %v453_v56  ;;  %v979_v59 = vpop.f32.mrb[3].mxu1  ;;  %501 = vmax.xlane.f32.xlu0 %v500_v57 }
 0x290   :  { %v503_v60 = vsel %vm499_vm5, %v498_v58, -inf }
 0x293   :  { %504 = vmax.xlane.f32.xlu0 %v503_v60 }
 0x2a9   :  { %522 = vrot.lane.b32.xlu0 %v302_v28, %s1081_s2  ;;  %v769_v28 = vld [vmem:[%s1336_s11] sm:$0xff] }
 0x2aa   :  { %v1045_v31 = vpack.c.bf16 %v770_v29, %v769_v28 }
 0x31c   :  { %v502_v61 = vpop.xlane.xlu0 %501 }
 0x31d   :  { %v506_v62 = vsub.f32 %v497_v54, %v502_v61 }
 0x31f   :  { %v508_v63 = vmul.f32 1.442695, %v506_v62 }
 0x320   :  { %v505_v1 = vpop.xlane.xlu0 %504 }
 0x321   :  { %1064 = vpow2.f32 %v508_v63  ;;  %v507_v2 = vsub.f32 %v498_v58, %v505_v1 }
 0x323   :  { %v510_v3 = vmul.f32 1.442695, %v507_v2 }
 0x324   :  { %v523_v5 = vpop.permute.xlu0 %522 }
 0x325   :  { %1066 = vpow2.f32 %v510_v3  ;;  %981 = vmatpush3.msk.msra.mxu0 %vm528_vm7, %v523_v5 }
 0x326   :  { %1038 = vmatprep.subr.bf16.mxu0 %v1076_v0 }
 0x32b   :  { %v1065_v6 = vpop.eup %1064 }
 0x32c   :  { %v512_v7 = vsel %vm499_vm5, %v1065_v6, 0.0 }
 0x32d   :  { %513 = vadd.xlane.f32.xlu1 %v512_v7 }
 0x32f   :  { %v1067_v8 = vpop.eup %1066 }
 0x330   :  { %v515_v9 = vsel %vm499_vm5, %v1067_v8, 0.0 }
 0x331   :  { %516 = vadd.xlane.f32.xlu1 %v515_v9 }
 0x342   :  { %601 = vrot.lane.b32.xlu1 %v1230_v30, %s1081_s2  ;;  %v771_v30 = vld [vmem:[%s1336_s11 + $0x10] sm:$0xff] }
 0x343   :  { %v1048_v33 = vpack.c.bf16 %v772_v32, %v771_v30 }
 0x3ba   :  { %v514_v10 = vpop.xlane.xlu1 %513 }
 0x3bb   :  { %1068 = vrcp.f32 %v514_v10 }
 0x3be   :  { %v517_v11 = vpop.xlane.xlu1 %516 }
 0x3bf   :  { %1070 = vrcp.f32 %v517_v11 }
 0x3c2   :  { %v602_v12 = vpop.permute.xlu1 %601 }
 0x3c3   :  { %986 = vmatpush3.msk.msra.mxu1 %vm528_vm7, %v602_v12 }
 0x3c4   :  { %1044 = vmatprep.subr.bf16.mxu1 %v1076_v0 }
 0x3c5   :  { %v1069_v13 = vpop.eup %1068 }
 0x3c6   :  { %v519_v14 = vmul.f32 %v1069_v13, %v1065_v6 }
 0x3c8   :  { %871 = vst.msk [vmem:[%s1334_s14] sm:$0xf] %vm499_vm5, %v519_v14  ;;  %983 = vmatmul.mubr.msk.f32.vlgmr.msra.gmra.mrb[6].mxu0 %vm524_vm8, %v519_v14 }
 0x3c9   :  { %v1071_v15 = vpop.eup %1070  ;;  %998 = vmatprep.mubr.msk.f32.mxu0 %vm1077_vm0, %v1078_v4  ;;  %1040 = vmatpush3.bf16.msra.mxu0 %v1039_v19 }
 0x3ca   :  { %v521_v16 = vmul.f32 %v1071_v15, %v1067_v8  ;;  %1041 = vmatprep.subr.bf16.mxu0 %v1076_v0 }
 0x3cc   :  { %872 = vst.msk [vmem:[%s1334_s14 + $0x4] sm:$0xf] %vm499_vm5, %v521_v16  ;;  %988 = vmatmul.mubr.msk.f32.vlgmr.msra.gmra.mrb[4].mxu1 %vm524_vm8, %v521_v16 }
 0x3cd   :  { %1017 = vmatprep.mubr.msk.f32.mxu1 %vm1077_vm0, %v1078_v4  ;;  %v681_v4 = vld [vmem:[%s1335_s9 + $0x18] sm:$0xff]  ;;  %1046 = vmatpush3.bf16.msra.mxu1 %v1045_v31 }
 0x3ce   :  { %v1042_v21 = vpack.c.bf16 %v681_v4, %v680_v20  ;;  %1047 = vmatprep.subr.bf16.mxu1 %v1076_v0 }
 0x3d0   :  { %1043 = vmatpush3.bf16.msra.mxu0 %v1042_v21 }
 0x3d1   :  { %1049 = vmatpush3.bf16.msra.mxu1 %v1048_v33 }
 0x3d2   :  { %1050 = vmatprep.subr.bf16.mxu1 %v1076_v0 }
 0x3d5   :  { %1052 = vmatpush3.bf16.msra.mxu1 %v1051_v36 }
 0x3d6   :  { %1053 = vmatprep.subr.bf16.mxu1 %v1076_v0  ;;  %v898_v0 = vld [vmem:[%s1338_s12] ss:$0 sm:$0xff] }
 0x3d9   :  { %1055 = vmatpush3.bf16.msra.mxu1 %v1054_v39 }
 0x49b   :  { %v597_v22 = vpop.f32.mrb[6].mxu0 }
 0x49c   :  { %v984_v23 = vpop.f32.mrb[7].mxu0 }
 0x49f   :  { %v674_v25 = vpop.f32.mrb[4].mxu1 }
 0x4a0   :  { %v691_v26 = vcombine.low %v597_v22, %v674_v25  ;;  %v989_v27 = vpop.f32.mrb[5].mxu1 }
 0x4a2   :  { %999 = vmatmul.mubr.msk.f32.vlgmr.msra.gmra.mrb[8].mxu0 %vm58_vm1, %v691_v26 }
 0x575   :  { %v760_v41 = vpop.f32.mrb[8].mxu0 }
 0x576   :  { %v761_v42 = vadd.f32 %v896_v40, %v760_v41  ;;  %v1000_v43 = vpop.f32.mrb[9].mxu0 }
 0x578   :  { %765 = vrot.lane.b32.xlu1 %v761_v42, %s1082_s27 }
 0x5ea   :  { %v766_v44 = vpop.permute.xlu1 %765 }
 0x5eb   :  { %v768_v45 = vsel %vm58_vm1, %v1221_v24, %v766_v44 }
 0x5ec   :  { %1018 = vmatmul.mubr.msk.f32.vlgmr.msra.gmra.mrb[6].mxu1 %vm784_vm9, %v768_v45 }
 0x6bf   :  { %v854_v46 = vpop.f32.mrb[6].mxu1 }
 0x6c0   :  { %v855_v47 = vadd.f32 %v898_v0, %v854_v46  ;;  %v1019_v48 = vpop.f32.mrb[7].mxu1 }
 0x6c2   :  { %v859_v49 = vsel %vm858_vm10, %v855_v47, -inf }
 0x6c3   :  { %860 = vmax.xlane.f32.xlu1 %v859_v49 }
 0x750   :  { %v861_v50 = vpop.xlane.xlu1 %860 }
 0x751   :  { %v862_v51 = vsub.f32 %v855_v47, %v861_v50 }
 0x753   :  { %v863_v52 = vmul.f32 1.442695, %v862_v51 }
 0x755   :  { %1072 = vpow2.f32 %v863_v52 }
 0x75f   :  { %v1073_v53 = vpop.eup %1072 }
 0x760   :  { %v865_v54 = vsel %vm858_vm10, %v1073_v53, 0.0 }
 0x761   :  { %866 = vadd.xlane.f32.xlu0 %v865_v54 }
 0x7ee   :  { %v867_v24 = vpop.xlane.xlu0 %866 }
 0x7ef   :  { %1074 = vrcp.f32 %v867_v24 }
 0x7f9   :  { %v1075_v55 = vpop.eup %1074 }
 0x7fa   :  { %v869_v56 = vmul.f32 %v1075_v55, %v1073_v53 }
 0x7fc   :  { %870 = vst.msk [vmem:[%s1339_s13] sm:$0xff] %vm858_vm10, %v869_v56 }

// kernel: model_forward.3
= control target key start
LH: loop header
LB: loop body
LE: loop exit
PB: predicated region body
PF: predicated region fallthrough
CT: control target
= control target key end

     0   :  { %v60_v0 = vlaneseq  ;;  %vm124_vm0 = vcmask 64512   ;;  %vm293_vm1 = vcmask 1041409   ;;  %vm295_vm2 = vcmask 1042434   ;;  %s449_s1 = inlined_call_operand.vmem [shape: f32[8,8], index: 1, kind: input, shape index: {}]   ;;  %s450_s0 = inlined_call_operand.vmem [shape: f32[8,2,2,8,8], index: 0, kind: input, shape index: {}]   ;;  %s451_s2 = inlined_call_operand.vmem [shape: f32[8,8], index: 2, kind: output, shape index: {}]  }
   0x1   :  { %v43_v2 = vld [vmem:[%s449_s1] sm:$0xff]  ;;  %v21_v19 = vld [vmem:[%s450_s0 + $0x50] sm:$0xff]  ;;  %v22_v20 = vld [vmem:[%s450_s0 + $0x58] sm:$0xff]  ;;  %vm297_vm3 = vcmask 1043459   ;;  %vm299_vm4 = vcmask 1044484   ;;  %vm301_vm5 = vcmask 1045509  }
   0x2   :  { %v61_v1 = vshrl.u32 %v60_v0, 7  ;;  %v13_v21 = vld [vmem:[%s450_s0 + $0x10] sm:$0xff]  ;;  %v14_v22 = vld [vmem:[%s450_s0 + $0x18] sm:$0xff]  ;;  %v46_v23 = vadd.f32 %v22_v20, %v21_v19  ;;  %vm303_vm6 = vcmask 1046534   ;;  %vm305_vm7 = vcmask 1047559  }
   0x3   :  { %v44_v24 = vadd.f32 %v14_v22, %v13_v21  ;;  %v25_v25 = vld [vmem:[%s450_s0 + $0x70] sm:$0xff]  ;;  %v26_v26 = vld [vmem:[%s450_s0 + $0x78] sm:$0xff] }
   0x4   :  { %v76_v3 = vsub.s32 2, %v61_v1  ;;  %v62_v4 = vsub.s32 0, %v61_v1  ;;  %v83_v5 = vsub.s32 3, %v61_v1  ;;  %v69_v6 = vsub.s32 1, %v61_v1  ;;  %v17_v27 = vld [vmem:[%s450_s0 + $0x30] sm:$0xff]  ;;  %v18_v28 = vld [vmem:[%s450_s0 + $0x38] sm:$0xff] }
   0x5   :  { %v97_v11 = vsub.s32 5, %v61_v1  ;;  %v90_v12 = vsub.s32 4, %v61_v1  ;;  %v111_v15 = vsub.s32 7, %v61_v1  ;;  %v104_v16 = vsub.s32 6, %v61_v1  ;;  %v33_v29 = vld [vmem:[%s450_s0 + $0xb0] sm:$0xff]  ;;  %v34_v34 = vld [vmem:[%s450_s0 + $0xb8] sm:$0xff] }
   0x6   :  { %v77_v7 = vrot.slane %v43_v2, %v76_v3  ;;  %v63_v8 = vrot.slane %v43_v2, %v62_v4  ;;  %v84_v9 = vrot.slane %v43_v2, %v83_v5  ;;  %v70_v10 = vrot.slane %v43_v2, %v69_v6  ;;  %v29_v35 = vld [vmem:[%s450_s0 + $0x90] sm:$0xff]  ;;  %v30_v36 = vld [vmem:[%s450_s0 + $0x98] sm:$0xff] }
   0x7   :  { %v98_v13 = vrot.slane %v43_v2, %v97_v11  ;;  %v91_v14 = vrot.slane %v43_v2, %v90_v12  ;;  %v112_v17 = vrot.slane %v43_v2, %v111_v15  ;;  %v105_v18 = vrot.slane %v43_v2, %v104_v16  ;;  %v41_v41 = vld [vmem:[%s450_s0 + $0xf0] sm:$0xff]  ;;  %v42_v46 = vld [vmem:[%s450_s0 + $0xf8] sm:$0xff] }
   0x8   :  { %79 = vbcast.lane.b32.xlu1 %v77_v7, 256  ;;  %65 = vbcast.lane.b32.xlu0 %v63_v8, 256  ;;  %v54_v30 = vmul.f32 0.5, %v46_v23  ;;  %v52_v31 = vmul.f32 0.5, %v44_v24  ;;  %v47_v32 = vadd.f32 %v26_v26, %v25_v25  ;;  %v45_v33 = vadd.f32 %v18_v28, %v17_v27  ;;  %v37_v47 = vld [vmem:[%s450_s0 + $0xd0] sm:$0xff]  ;;  %v38_v48 = vld [vmem:[%s450_s0 + $0xd8] sm:$0xff] }
   0x9   :  { %v49_v39 = vadd.f32 %v34_v34, %v33_v29  ;;  %v48_v40 = vadd.f32 %v30_v36, %v29_v35  ;;  %v51_v55 = vadd.f32 %v42_v46, %v41_v41  ;;  %v50_v56 = vadd.f32 %v38_v48, %v37_v47 }
   0xa   :  { %v55_v44 = vmul.f32 0.5, %v47_v32  ;;  %v53_v45 = vmul.f32 0.5, %v45_v33 }
   0xb   :  { %v57_v59 = vmul.f32 0.5, %v49_v39  ;;  %v56_v60 = vmul.f32 0.5, %v48_v40 }
   0xc   :  { %86 = vbcast.lane.b32.xlu1 %v84_v9, 256  ;;  %72 = vbcast.lane.b32.xlu0 %v70_v10, 256  ;;  %v59_v9 = vmul.f32 0.5, %v51_v55  ;;  %v58_v10 = vmul.f32 0.5, %v50_v56 }
  0x10   :  { %100 = vbcast.lane.b32.xlu1 %v98_v13, 256  ;;  %93 = vbcast.lane.b32.xlu0 %v91_v14, 256 }
  0x14   :  { %114 = vbcast.lane.b32.xlu1 %v112_v17, 256  ;;  %107 = vbcast.lane.b32.xlu0 %v105_v18, 256 }
  0x7a   :  { %v80_v37 = vpop.permute.xlu1 %79  ;;  %v66_v38 = vpop.permute.xlu0 %65 }
  0x7b   :  { %v118_v42 = vmul.f32 %v80_v37, %v54_v30  ;;  %v116_v43 = vmul.f32 %v66_v38, %v52_v31 }
  0x7d   :  { %v139_v49 = vsel %vm124_vm0, %v118_v42, 0.0  ;;  %v125_v50 = vsel %vm124_vm0, %v116_v43, 0.0 }
  0x7e   :  { %v140_v51 = vrot.slane %v139_v49, 4  ;;  %v126_v52 = vrot.slane %v125_v50, 4  ;;  %v87_v53 = vpop.permute.xlu1 %86  ;;  %v73_v54 = vpop.permute.xlu0 %72 }
  0x7f   :  { %v119_v57 = vmul.f32 %v87_v53, %v55_v44  ;;  %v117_v58 = vmul.f32 %v73_v54, %v53_v45 }
  0x80   :  { %v141_v61 = vadd.f32 %v140_v51, %v139_v49  ;;  %v127_v62 = vadd.f32 %v126_v52, %v125_v50 }
  0x81   :  { %v146_v63 = vsel %vm124_vm0, %v119_v57, 0.0  ;;  %v132_v0 = vsel %vm124_vm0, %v117_v58, 0.0 }
  0x82   :  { %v147_v1 = vrot.slane %v146_v63, 4  ;;  %v133_v2 = vrot.slane %v132_v0, 4  ;;  %v101_v3 = vpop.permute.xlu1 %100  ;;  %v94_v4 = vpop.permute.xlu0 %93  ;;  %v128_v5 = vrot.slane %v127_v62, 2  ;;  %v142_v6 = vrot.slane %v141_v61, 2 }
  0x83   :  { %v121_v7 = vmul.f32 %v101_v3, %v57_v59  ;;  %v120_v8 = vmul.f32 %v94_v4, %v56_v60  ;;  %v11_v59 = vld [vmem:[%s450_s0] sm:$0xff]  ;;  %v12_v60 = vld [vmem:[%s450_s0 + $0x8] sm:$0xff] }
  0x84   :  { %v148_v11 = vadd.f32 %v147_v1, %v146_v63  ;;  %v134_v12 = vadd.f32 %v133_v2, %v132_v0  ;;  %v129_v13 = vadd.f32 %v128_v5, %v127_v62  ;;  %v143_v14 = vadd.f32 %v142_v6, %v141_v61  ;;  %v15_v62 = vld [vmem:[%s450_s0 + $0x20] sm:$0xff]  ;;  %v16_v63 = vld [vmem:[%s450_s0 + $0x28] sm:$0xff] }
  0x85   :  { %v160_v15 = vsel %vm124_vm0, %v121_v7, 0.0  ;;  %v153_v16 = vsel %vm124_vm0, %v120_v8, 0.0  ;;  %v181_v61 = vadd.f32 %v12_v60, %v11_v59  ;;  %v19_v0 = vld [vmem:[%s450_s0 + $0x40] sm:$0xff]  ;;  %v20_v1 = vld [vmem:[%s450_s0 + $0x48] sm:$0xff]  ;;  %v182_v3 = vadd.f32 %v16_v63, %v15_v62 }
  0x86   :  { %v161_v17 = vrot.slane %v160_v15, 4  ;;  %v154_v18 = vrot.slane %v153_v16, 4  ;;  %v115_v19 = vpop.permute.xlu1 %114  ;;  %v108_v20 = vpop.permute.xlu0 %107  ;;  %v130_v21 = vrot.slane %v129_v13, 1  ;;  %v135_v22 = vrot.slane %v134_v12, 2  ;;  %v23_v5 = vld [vmem:[%s450_s0 + $0x60] sm:$0xff]  ;;  %v24_v6 = vld [vmem:[%s450_s0 + $0x68] sm:$0xff] }
  0x87   :  { %v123_v23 = vmul.f32 %v115_v19, %v59_v9  ;;  %v122_v24 = vmul.f32 %v108_v20, %v58_v10  ;;  %v144_v25 = vrot.slane %v143_v14, 1  ;;  %v149_v26 = vrot.slane %v148_v11, 2  ;;  %v27_v7 = vld [vmem:[%s450_s0 + $0x80] sm:$0xff]  ;;  %v28_v8 = vld [vmem:[%s450_s0 + $0x88] sm:$0xff] }
  0x88   :  { %v162_v27 = vadd.f32 %v161_v17, %v160_v15  ;;  %v155_v28 = vadd.f32 %v154_v18, %v153_v16  ;;  %v131_v29 = vadd.f32 %v130_v21, %v129_v13  ;;  %v136_v30 = vadd.f32 %v135_v22, %v134_v12  ;;  %v31_v15 = vld [vmem:[%s450_s0 + $0xa0] sm:$0xff]  ;;  %v32_v16 = vld [vmem:[%s450_s0 + $0xa8] sm:$0xff] }
  0x89   :  { %v174_v31 = vsel %vm124_vm0, %v123_v23, 0.0  ;;  %v167_v32 = vsel %vm124_vm0, %v122_v24, 0.0  ;;  %v150_v33 = vadd.f32 %v149_v26, %v148_v11  ;;  %v145_v38 = vadd.f32 %v144_v25, %v143_v14  ;;  %v35_v17 = vld [vmem:[%s450_s0 + $0xc0] sm:$0xff]  ;;  %v36_v18 = vld [vmem:[%s450_s0 + $0xc8] sm:$0xff] }
  0x8a   :  { %v175_v34 = vrot.slane %v174_v31, 4  ;;  %v168_v35 = vrot.slane %v167_v32, 4  ;;  %198 = vbcast.lane.b32.xlu0 %v131_v29, 256  ;;  %v137_v36 = vrot.slane %v136_v30, 1  ;;  %v156_v37 = vrot.slane %v155_v28, 2 }
  0x8b   :  { %v151_v39 = vrot.slane %v150_v33, 1  ;;  %v163_v40 = vrot.slane %v162_v27, 2  ;;  %v189_v2 = vmul.f32 0.5, %v181_v61  ;;  %v183_v4 = vadd.f32 %v20_v1, %v19_v0 }
  0x8c   :  { %v176_v41 = vadd.f32 %v175_v34, %v174_v31  ;;  %v169_v42 = vadd.f32 %v168_v35, %v167_v32  ;;  %v138_v43 = vadd.f32 %v137_v36, %v136_v30  ;;  %v157_v44 = vadd.f32 %v156_v37, %v155_v28  ;;  %v39_v30 = vld [vmem:[%s450_s0 + $0xe0] sm:$0xff]  ;;  %v40_v31 = vld [vmem:[%s450_s0 + $0xe8] sm:$0xff] }
  0x8d   :  { %v164_v45 = vadd.f32 %v163_v40, %v162_v27  ;;  %v152_v49 = vadd.f32 %v151_v39, %v150_v33  ;;  %v184_v10 = vadd.f32 %v24_v6, %v23_v5  ;;  %v190_v12 = vmul.f32 0.5, %v182_v3 }
  0x8e   :  { %201 = vbcast.lane.b32.xlu1 %v138_v43, 256  ;;  %204 = vbcast.lane.b32.xlu0 %v145_v38, 256  ;;  %v158_v46 = vrot.slane %v157_v44, 1  ;;  %v170_v47 = vrot.slane %v169_v42, 2  ;;  %v177_v48 = vrot.slane %v176_v41, 2  ;;  %v191_v13 = vmul.f32 0.5, %v183_v4 }
  0x8f   :  { %v165_v51 = vrot.slane %v164_v45, 1  ;;  %v185_v14 = vadd.f32 %v28_v8, %v27_v7  ;;  %v192_v23 = vmul.f32 0.5, %v184_v10  ;;  %v186_v24 = vadd.f32 %v32_v16, %v31_v15 }
  0x90   :  { %v159_v50 = vadd.f32 %v158_v46, %v157_v44  ;;  %v171_v52 = vadd.f32 %v170_v47, %v169_v42  ;;  %v178_v53 = vadd.f32 %v177_v48, %v176_v41  ;;  %v187_v28 = vadd.f32 %v36_v18, %v35_v17 }
  0x91   :  { %v166_v55 = vadd.f32 %v165_v51, %v164_v45  ;;  %v193_v27 = vmul.f32 0.5, %v185_v14  ;;  %v194_v39 = vmul.f32 0.5, %v186_v24  ;;  %v188_v43 = vadd.f32 %v40_v31, %v39_v30 }
  0x92   :  { %207 = vbcast.lane.b32.xlu1 %v152_v49, 256  ;;  %210 = vbcast.lane.b32.xlu0 %v159_v50, 256  ;;  %v172_v54 = vrot.slane %v171_v52, 1  ;;  %v179_v57 = vrot.slane %v178_v53, 1  ;;  %v195_v42 = vmul.f32 0.5, %v187_v28 }
  0x94   :  { %v173_v56 = vadd.f32 %v172_v54, %v171_v52  ;;  %v180_v58 = vadd.f32 %v179_v57, %v178_v53  ;;  %v196_v57 = vmul.f32 0.5, %v188_v43 }
  0x96   :  { %213 = vbcast.lane.b32.xlu1 %v166_v55, 256  ;;  %216 = vbcast.lane.b32.xlu0 %v173_v56, 256 }
  0x9a   :  { %219 = vbcast.lane.b32.xlu1 %v180_v58, 256 }
  0xfc   :  { %v199_v9 = vpop.permute.xlu0 %198 }
  0xfd   :  { %v221_v11 = vmul.f32 %v199_v9, %v189_v2 }
  0xff   :  { %v229_v19 = vsel %vm124_vm0, %v221_v11, 0.0 }
 0x100   :  { %v230_v20 = vrot.slane %v229_v19, 4  ;;  %v202_v21 = vpop.permute.xlu1 %201  ;;  %v205_v22 = vpop.permute.xlu0 %204 }
 0x101   :  { %v222_v25 = vmul.f32 %v202_v21, %v190_v12  ;;  %v223_v26 = vmul.f32 %v205_v22, %v191_v13 }
 0x102   :  { %v231_v29 = vadd.f32 %v230_v20, %v229_v19 }
 0x103   :  { %v236_v32 = vsel %vm124_vm0, %v222_v25, 0.0  ;;  %v243_v33 = vsel %vm124_vm0, %v223_v26, 0.0 }
 0x104   :  { %v232_v34 = vrot.slane %v231_v29, 2  ;;  %v237_v35 = vrot.slane %v236_v32, 4  ;;  %v244_v36 = vrot.slane %v243_v33, 4  ;;  %v208_v37 = vpop.permute.xlu1 %207  ;;  %v211_v38 = vpop.permute.xlu0 %210 }
 0x105   :  { %v224_v40 = vmul.f32 %v208_v37, %v192_v23  ;;  %v225_v41 = vmul.f32 %v211_v38, %v193_v27 }
 0x106   :  { %v233_v44 = vadd.f32 %v232_v34, %v231_v29  ;;  %v238_v45 = vadd.f32 %v237_v35, %v236_v32  ;;  %v245_v46 = vadd.f32 %v244_v36, %v243_v33 }
 0x107   :  { %v250_v47 = vsel %vm124_vm0, %v224_v40, 0.0  ;;  %v257_v48 = vsel %vm124_vm0, %v225_v41, 0.0 }
 0x108   :  { %v239_v49 = vrot.slane %v238_v45, 2  ;;  %v246_v50 = vrot.slane %v245_v46, 2  ;;  %v251_v51 = vrot.slane %v250_v47, 4  ;;  %v214_v52 = vpop.permute.xlu1 %213  ;;  %v217_v53 = vpop.permute.xlu0 %216  ;;  %v258_v54 = vrot.slane %v257_v48, 4 }
 0x109   :  { %v226_v55 = vmul.f32 %v214_v52, %v194_v39  ;;  %v227_v56 = vmul.f32 %v217_v53, %v195_v42  ;;  %v234_v58 = vrot.slane %v233_v44, 1 }
 0x10a   :  { %v240_v59 = vadd.f32 %v239_v49, %v238_v45  ;;  %v247_v60 = vadd.f32 %v246_v50, %v245_v46  ;;  %v252_v61 = vadd.f32 %v251_v51, %v250_v47  ;;  %v259_v62 = vadd.f32 %v258_v54, %v257_v48 }
 0x10b   :  { %v264_v63 = vsel %vm124_vm0, %v226_v55, 0.0  ;;  %v271_v0 = vsel %vm124_vm0, %v227_v56, 0.0  ;;  %v235_v9 = vadd.f32 %v234_v58, %v233_v44 }
 0x10c   :  { %v241_v1 = vrot.slane %v240_v59, 1  ;;  %v248_v2 = vrot.slane %v247_v60, 1  ;;  %v253_v3 = vrot.slane %v252_v61, 2  ;;  %v265_v4 = vrot.slane %v264_v63, 4  ;;  %v220_v5 = vpop.permute.xlu1 %219 }
 0x10d   :  { %v260_v6 = vrot.slane %v259_v62, 2  ;;  %v272_v7 = vrot.slane %v271_v0, 4  ;;  %v228_v8 = vmul.f32 %v220_v5, %v196_v57 }
 0x10e   :  { %v242_v10 = vadd.f32 %v241_v1, %v240_v59  ;;  %v254_v11 = vadd.f32 %v253_v3, %v252_v61  ;;  %v266_v12 = vadd.f32 %v265_v4, %v264_v63  ;;  %v249_v13 = vadd.f32 %v248_v2, %v247_v60 }
 0x10f   :  { %v261_v14 = vadd.f32 %v260_v6, %v259_v62  ;;  %v273_v15 = vadd.f32 %v272_v7, %v271_v0  ;;  %v278_v16 = vsel %vm124_vm0, %v228_v8, 0.0 }
 0x110   :  { %v294_v17 = vsel %vm293_vm1, %v242_v10, %v235_v9  ;;  %v255_v18 = vrot.slane %v254_v11, 1  ;;  %v267_v19 = vrot.slane %v266_v12, 2  ;;  %v279_v20 = vrot.slane %v278_v16, 4 }
 0x111   :  { %v262_v21 = vrot.slane %v261_v14, 1  ;;  %v274_v22 = vrot.slane %v273_v15, 2  ;;  %v296_v26 = vsel %vm295_vm2, %v249_v13, %v294_v17 }
 0x112   :  { %v256_v23 = vadd.f32 %v255_v18, %v254_v11  ;;  %v268_v24 = vadd.f32 %v267_v19, %v266_v12  ;;  %v280_v25 = vadd.f32 %v279_v20, %v278_v16 }
 0x113   :  { %v263_v27 = vadd.f32 %v262_v21, %v261_v14  ;;  %v275_v28 = vadd.f32 %v274_v22, %v273_v15 }
 0x114   :  { %v298_v29 = vsel %vm297_vm3, %v256_v23, %v296_v26  ;;  %v269_v30 = vrot.slane %v268_v24, 1  ;;  %v281_v31 = vrot.slane %v280_v25, 2 }
 0x115   :  { %v276_v32 = vrot.slane %v275_v28, 1  ;;  %v300_v35 = vsel %vm299_vm4, %v263_v27, %v298_v29 }
 0x116   :  { %v270_v33 = vadd.f32 %v269_v30, %v268_v24  ;;  %v282_v34 = vadd.f32 %v281_v31, %v280_v25 }
 0x117   :  { %v277_v36 = vadd.f32 %v276_v32, %v275_v28 }
 0x118   :  { %v302_v37 = vsel %vm301_vm5, %v270_v33, %v300_v35  ;;  %v283_v38 = vrot.slane %v282_v34, 1 }
 0x119   :  { %v304_v40 = vsel %vm303_vm6, %v277_v36, %v302_v37 }
 0x11a   :  { %v284_v39 = vadd.f32 %v283_v38, %v282_v34 }
 0x11c   :  { %v306_v41 = vsel %vm305_vm7, %v284_v39, %v304_v40 }
 0x11d   :  { %308 = vst.msk [vmem:[%s451_s2] sm:$0xff] %vm124_vm0, %v306_v41 }

</bundles_post_ra>
